<compile_context>
chip_gen: v6e
topology: v6e:2x2x1
jax: 0.10.0
libtpu: 0.0.40
codegen_flags: <defaults>
</compile_context>

<pallas_src>
import jax
import jax.numpy as jnp
from jax.experimental import pallas as pl
from jax.experimental.pallas import tpu as pltpu

LANE = 128  # padded lane width for the narrow (10 / 100 / 10) feature dims


def mnist_nn_kernel(x_ref,
                    w1_ref, b1_ref,
                    w2_ref, b2_ref,
                    w3_ref, b3_ref,
                    o_ref):
    # Cast the f32 x tile to bf16 in-kernel: the VPU cast on the VMEM tile is
    # free (kernel is DMA-bound), and it avoids a separate XLA cast HBM pass.
    x = x_ref[...].astype(jnp.bfloat16)

    h = jnp.dot(x, w1_ref[...], preferred_element_type=jnp.float32) + b1_ref[...]
    h = jnp.maximum(h, 0.0)

    # Layers 2/3 are ~8 MFLOP each and completely hidden under the x DMA:
    # keep them in f32 (no pointless casts, slightly better accuracy).
    h = jnp.dot(h, w2_ref[...], preferred_element_type=jnp.float32) + b2_ref[...]
    h = jnp.maximum(h, 0.0)

    out = jnp.dot(h, w3_ref[...], preferred_element_type=jnp.float32) + b3_ref[...]
    o_ref[...] = out.astype(o_ref.dtype)


def _round_up(x, m):
    return ((x + m - 1) // m) * m


def _pad_axis(a, target, axis):
    pad = target - a.shape[axis]
    if pad <= 0:
        return a
    widths = [(0, 0)] * a.ndim
    widths[axis] = (0, pad)
    return jnp.pad(a, widths)


def mnist_nn_forward(xb, params, *, batch_tile=None):
    """Forward pass of Mnist_NN. xb: (B, 1, 28, 28) or anything flattening to (B, 784)."""
    x = xb.reshape(-1, 784)                               # xb.view(-1, 784)
    if x.dtype != jnp.float32:
        x = x.astype(jnp.float32)
    B = x.shape[0]

    if batch_tile is None:
        # Large tiles amortize the per-grid-step overhead; aim for >= 2 grid
        # steps when B allows (v7x megacore); never over-fetch at tiny B.
        batch_tile = min(1024, _round_up(pl.cdiv(B, 2), 8))
        batch_tile = max(batch_tile, 8)
    n_tiles = pl.cdiv(B, batch_tile)                      # ragged last block handled by Pallas

    (w1, b1), (w2, b2), (w3, b3) = params
    # Pre-transpose weights (out,in) -> (in,out) and zero-pad the narrow
    # feature dims (10, 100, 10) out to 128 lanes; biases as (1, 128) f32 rows.
    w1t = _pad_axis(w1.T, LANE, 1).astype(jnp.bfloat16)                      # (784, 128) bf16
    w2t = _pad_axis(_pad_axis(w2.T, LANE, 0), LANE, 1).astype(jnp.float32)   # (128, 128) f32
    w3t = _pad_axis(_pad_axis(w3.T, LANE, 0), LANE, 1).astype(jnp.float32)   # (128, 128) f32
    b1r = _pad_axis(b1, LANE, 0).reshape(1, LANE).astype(jnp.float32)
    b2r = _pad_axis(b2, LANE, 0).reshape(1, LANE).astype(jnp.float32)
    b3r = _pad_axis(b3, LANE, 0).reshape(1, LANE).astype(jnp.float32)

    def full_spec(shape):
        # Grid-invariant: weights/biases stay resident in VMEM across steps.
        return pl.BlockSpec(shape, lambda i: (0,) * len(shape))

    # VMEM working-set estimate (includes the 784 -> 896 lane padding of the
    # f32 x tile). Only raise the scoped limit when big tiles need it, and cap
    # at 48 MiB so v7x (64 MiB physical VMEM) keeps headroom.
    x_lanes = _round_up(784, LANE)
    vmem_bytes = (2 * batch_tile * x_lanes * 4            # double-buffered f32 x tile
                  + 2 * batch_tile * LANE * 2             # double-buffered bf16 out tile
                  + 784 * LANE * 2 + 2 * LANE * LANE * 4 + 3 * LANE * 4   # weights/biases
                  + (4 << 20))                            # compiler scratch headroom
    vmem_limit = min(int(vmem_bytes * 1.25), 48 << 20) if vmem_bytes > (24 << 20) else None

    out_padded = pl.pallas_call(
        mnist_nn_kernel,
        out_shape=jax.ShapeDtypeStruct((B, LANE), jnp.bfloat16),
        grid_spec=pltpu.PrefetchScalarGridSpec(
            num_scalar_prefetch=0,
            grid=(n_tiles,),
            in_specs=[
                pl.BlockSpec((batch_tile, 784), lambda i: (i, 0)),
                full_spec(w1t.shape), full_spec(b1r.shape),
                full_spec(w2t.shape), full_spec(b2r.shape),
                full_spec(w3t.shape), full_spec(b3r.shape),
            ],
            out_specs=pl.BlockSpec((batch_tile, LANE), lambda i: (i, 0)),
        ),
        compiler_params=pltpu.CompilerParams(
            dimension_semantics=("parallel",),
            vmem_limit_bytes=vmem_limit),
    )(x, w1t, b1r, w2t, b2r, w3t, b3r)

    # Drop the zero-padded output lanes (true num_classes = 10).
    return out_padded[:, :10].astype(jnp.float32)


def init_params(key):
    """Deterministic init mimicking nn.Linear default (uniform +-1/sqrt(fan_in))."""
    dims = [(784, 10), (10, 100), (100, 10)]
    params = []
    for (fan_in, fan_out) in dims:
        key, kw, kb = jax.random.split(key, 3)
        bound = 1.0 / (fan_in ** 0.5)
        w = jax.random.uniform(kw, (fan_out, fan_in), jnp.float32, -bound, bound)
        b = jax.random.uniform(kb, (fan_out,), jnp.float32, -bound, bound)
        params.append((w, b))
    return params


def reference_forward(xb, params):
    x = xb.reshape(-1, 784)
    (w1, b1), (w2, b2), (w3, b3) = params
    x = jax.nn.relu(x @ w1.T + b1)
    x = jax.nn.relu(x @ w2.T + b2)
    return x @ w3.T + b3


if __name__ == "__main__":
    key = jax.random.PRNGKey(0)
    key, kx = jax.random.split(key)

    # Small MNIST-like batch: (B, 1, 28, 28) NCHW. B = 12 deliberately not a
    # multiple of the batch tile so the ragged-last-block path is exercised
    # (and the auto tile of 8 gives a 2-step grid even at this tiny size).
    xb = jax.random.normal(kx, (12, 1, 28, 28), dtype=jnp.float32)
    params = init_params(key)

    out = mnist_nn_forward(xb, params)
    out = jax.block_until_ready(out)

    ref = reference_forward(xb, params)
    assert out.shape == (12, 10), out.shape
    # bf16 x/w1 operands on the MXU (f32 accumulation, f32 layers 2/3) plus a
    # bf16 output writeback -> compare with bf16-rounding-consistent tolerance.
    assert jnp.allclose(out, ref, atol=3e-2, rtol=3e-2), "mismatch vs reference"

    print("KERNEL_OK")
</pallas_src>

<mosaic_0001>
module attributes {stable_mosaic.version = 11 : i64} {
  func.func @mnist_nn_kernel(%arg0: i32, %arg1: memref<8x784xf32, #tpu.memory_space<vmem>>, %arg2: memref<784x128xbf16, #tpu.memory_space<vmem>>, %arg3: memref<1x128xf32, #tpu.memory_space<vmem>>, %arg4: memref<128x128xf32, #tpu.memory_space<vmem>>, %arg5: memref<1x128xf32, #tpu.memory_space<vmem>>, %arg6: memref<128x128xf32, #tpu.memory_space<vmem>>, %arg7: memref<1x128xf32, #tpu.memory_space<vmem>>, %arg8: memref<8x128xbf16, #tpu.memory_space<vmem>>) attributes {dimension_semantics = [#tpu.dimension_semantics<parallel>], iteration_bounds = array<i64: 2>, scalar_prefetch = 0 : i64, scratch_operands = 0 : i64, tpu.core_type = #tpu.core_type<tc>, window_params = [{transform_indices = @transform_0, window_bounds = array<i64: 8, 784>}, {pipeline_mode = #tpu.pipeline_mode<synchronous>, transform_indices = @transform_1, window_bounds = array<i64: 784, 128>}, {pipeline_mode = #tpu.pipeline_mode<synchronous>, transform_indices = @transform_2, window_bounds = array<i64: 1, 128>}, {pipeline_mode = #tpu.pipeline_mode<synchronous>, transform_indices = @transform_3, window_bounds = array<i64: 128, 128>}, {pipeline_mode = #tpu.pipeline_mode<synchronous>, transform_indices = @transform_4, window_bounds = array<i64: 1, 128>}, {pipeline_mode = #tpu.pipeline_mode<synchronous>, transform_indices = @transform_5, window_bounds = array<i64: 128, 128>}, {pipeline_mode = #tpu.pipeline_mode<synchronous>, transform_indices = @transform_6, window_bounds = array<i64: 1, 128>}, {transform_indices = @transform_7, window_bounds = array<i64: 8, 128>}]} {
    %c0 = arith.constant 0 : index
    %c0_0 = arith.constant 0 : index
    %0 = vector.load %arg1[%c0, %c0_0] : memref<8x784xf32, #tpu.memory_space<vmem>>, vector<8x784xf32>
    %1 = arith.truncf %0 : vector<8x784xf32> to vector<8x784xbf16>
    %c0_1 = arith.constant 0 : index
    %c0_2 = arith.constant 0 : index
    %2 = vector.load %arg2[%c0_1, %c0_2] : memref<784x128xbf16, #tpu.memory_space<vmem>>, vector<784x128xbf16>
    %cst = arith.constant dense<0.000000e+00> : vector<8x128xf32>
    %3 = tpu.matmul %1, %2, %cst {dimension_numbers = #tpu.dot_dimension_numbers<[1], [0], [0], [1], [0, 0, 1, 1], [], []>} : vector<8x784xbf16>, vector<784x128xbf16>, vector<8x128xf32> -> vector<8x128xf32>
    %c0_3 = arith.constant 0 : index
    %c0_4 = arith.constant 0 : index
    %4 = vector.load %arg3[%c0_3, %c0_4] : memref<1x128xf32, #tpu.memory_space<vmem>>, vector<1x128xf32>
    %5 = vector.broadcast %4 : vector<1x128xf32> to vector<8x128xf32>
    %6 = arith.addf %3, %5 : vector<8x128xf32>
    %cst_5 = arith.constant 0.000000e+00 : f32
    %7 = vector.broadcast %cst_5 : f32 to vector<8x128xf32>
    %8 = arith.maximumf %6, %7 : vector<8x128xf32>
    %c0_6 = arith.constant 0 : index
    %c0_7 = arith.constant 0 : index
    %9 = vector.load %arg4[%c0_6, %c0_7] : memref<128x128xf32, #tpu.memory_space<vmem>>, vector<128x128xf32>
    %cst_8 = arith.constant dense<0.000000e+00> : vector<8x128xf32>
    %10 = tpu.matmul %8, %9, %cst_8 {dimension_numbers = #tpu.dot_dimension_numbers<[1], [0], [0], [1], [0, 0, 1, 1], [], []>} : vector<8x128xf32>, vector<128x128xf32>, vector<8x128xf32> -> vector<8x128xf32>
    %c0_9 = arith.constant 0 : index
    %c0_10 = arith.constant 0 : index
    %11 = vector.load %arg5[%c0_9, %c0_10] : memref<1x128xf32, #tpu.memory_space<vmem>>, vector<1x128xf32>
    %12 = vector.broadcast %11 : vector<1x128xf32> to vector<8x128xf32>
    %13 = arith.addf %10, %12 : vector<8x128xf32>
    %cst_11 = arith.constant 0.000000e+00 : f32
    %14 = vector.broadcast %cst_11 : f32 to vector<8x128xf32>
    %15 = arith.maximumf %13, %14 : vector<8x128xf32>
    %c0_12 = arith.constant 0 : index
    %c0_13 = arith.constant 0 : index
    %16 = vector.load %arg6[%c0_12, %c0_13] : memref<128x128xf32, #tpu.memory_space<vmem>>, vector<128x128xf32>
    %cst_14 = arith.constant dense<0.000000e+00> : vector<8x128xf32>
    %17 = tpu.matmul %15, %16, %cst_14 {dimension_numbers = #tpu.dot_dimension_numbers<[1], [0], [0], [1], [0, 0, 1, 1], [], []>} : vector<8x128xf32>, vector<128x128xf32>, vector<8x128xf32> -> vector<8x128xf32>
    %c0_15 = arith.constant 0 : index
    %c0_16 = arith.constant 0 : index
    %18 = vector.load %arg7[%c0_15, %c0_16] : memref<1x128xf32, #tpu.memory_space<vmem>>, vector<1x128xf32>
    %19 = vector.broadcast %18 : vector<1x128xf32> to vector<8x128xf32>
    %20 = arith.addf %17, %19 : vector<8x128xf32>
    %21 = arith.truncf %20 : vector<8x128xf32> to vector<8x128xbf16>
    %c0_17 = arith.constant 0 : index
    %c0_18 = arith.constant 0 : index
    %22 = vector.load %arg8[%c0_17, %c0_18] : memref<8x128xbf16, #tpu.memory_space<vmem>>, vector<8x128xbf16>
    tpu.vector_store %arg8[%c0_17, %c0_18], %21 {strides = array<i32>} : memref<8x128xbf16, #tpu.memory_space<vmem>>, vector<8x128xbf16>,
    return
  }
  func.func @transform_0(%arg0: i32) -> (i32, i32) {
    %c0_i32 = arith.constant 0 : i32
    %c0_i32_0 = arith.constant 0 : i32
    return %arg0, %c0_i32 : i32, i32
  }
  func.func @transform_1(%arg0: i32) -> (i32, i32) {
    %c0_i32 = arith.constant 0 : i32
    %c0_i32_0 = arith.constant 0 : i32
    %c0_i32_1 = arith.constant 0 : i32
    return %c0_i32, %c0_i32_0 : i32, i32
  }
  func.func @transform_2(%arg0: i32) -> (i32, i32) {
    %c0_i32 = arith.constant 0 : i32
    %c0_i32_0 = arith.constant 0 : i32
    %c0_i32_1 = arith.constant 0 : i32
    return %c0_i32, %c0_i32_0 : i32, i32
  }
  func.func @transform_3(%arg0: i32) -> (i32, i32) {
    %c0_i32 = arith.constant 0 : i32
    %c0_i32_0 = arith.constant 0 : i32
    %c0_i32_1 = arith.constant 0 : i32
    return %c0_i32, %c0_i32_0 : i32, i32
  }
  func.func @transform_4(%arg0: i32) -> (i32, i32) {
    %c0_i32 = arith.constant 0 : i32
    %c0_i32_0 = arith.constant 0 : i32
    %c0_i32_1 = arith.constant 0 : i32
    return %c0_i32, %c0_i32_0 : i32, i32
  }
  func.func @transform_5(%arg0: i32) -> (i32, i32) {
    %c0_i32 = arith.constant 0 : i32
    %c0_i32_0 = arith.constant 0 : i32
    %c0_i32_1 = arith.constant 0 : i32
    return %c0_i32, %c0_i32_0 : i32, i32
  }
  func.func @transform_6(%arg0: i32) -> (i32, i32) {
    %c0_i32 = arith.constant 0 : i32
    %c0_i32_0 = arith.constant 0 : i32
    %c0_i32_1 = arith.constant 0 : i32
    return %c0_i32, %c0_i32_0 : i32, i32
  }
  func.func @transform_7(%arg0: i32) -> (i32, i32) {
    %c0_i32 = arith.constant 0 : i32
    %c0_i32_0 = arith.constant 0 : i32
    return %arg0, %c0_i32 : i32, i32
  }
}

</mosaic_0001>

<bundles_post_ra>
// kernel: tpu_custom_call.1
= control target key start
LH: loop header
LB: loop body
LE: loop exit
PB: predicated region body
PF: predicated region fallthrough
CT: control target
= control target key end

     0   :  { %s2068_s0 = inlined_call_operand.hbm [shape: f32[12,784], index: 0, kind: input, shape index: {}]   ;;  %s2069_s1 = inlined_call_operand.hbm [shape: bf16[784,128], index: 1, kind: input, shape index: {}]   ;;  %s2070_s2 = inlined_call_operand.vmem [shape: f32[1,128], index: 2, kind: input, shape index: {}]   ;;  %s2071_s3 = inlined_call_operand.hbm [shape: f32[128,128], index: 3, kind: input, shape index: {}]   ;;  %s2072_s4 = inlined_call_operand.vmem [shape: f32[1,128], index: 4, kind: input, shape index: {}]   ;;  %s2073_s5 = inlined_call_operand.hbm [shape: f32[128,128], index: 5, kind: input, shape index: {}]   ;;  %s2074_s6 = inlined_call_operand.vmem [shape: f32[1,128], index: 6, kind: input, shape index: {}]   ;;  %s2075_s7 = inlined_call_operand.hbm [shape: bf16[12,128], index: 7, kind: output, shape index: {}]  }
   0x1   :  { %2080 = sst [smem:[#allocation15_spill]] %s2069_s1 }
   0x2   :  { %2081 = sst [smem:[#allocation16_spill]] %s2071_s3 }
   0x3   :  { %12 = vsyncpa [#allocation3], 0 }
   0x4   :  { %14 = vsyncpa [#allocation3 + $0x1], 0 }
   0x5   :  { %15 = vsyncpa [#allocation6], 0 }
   0x6   :  { %16 = vsyncpa [#allocation9], 0 }
   0x7   :  { %17 = vsyncpa [#allocation4], 0 }
   0x8   :  { %19 = vsyncpa [#allocation4 + $0x1], 0  ;;  %s1833_s24 = smov 0   ;;  %s1835_s25 = smov 0  }
   0x9   :  { %s1837_s26 = smov 0   ;;  %s1839_s27 = smov 0  }
   0xa LB: > { %s1854_s28 = sadd.s32 4294967295, %s1780_s27   ;;  %s1220_s29 = sadd.s32 4294967294, %s1780_s27   ;;  %s1780_s27 = sphi %s1839_s27, %s2103_s27   ;;  %s1776_s26 = sphi %s1837_s26, %s2102_s26   ;;  %s1772_s25 = sphi %s1835_s25, %s2101_s25   ;;  %s1768_s24 = sphi %s1833_s24, %s2100_s24  }
   0xb   : > { %p45_p0 = scmp.ne.s32.totalorder %s1772_s25, %s1768_s24  ;;  %p2076_p1 = scmp.eq.s32.totalorder %s1854_s28, 0 }
   0xc   : > { %p201_p3 = scmp.eq.s32.totalorder %s1220_s29, 1  ;;  %p1221_p5 = scmp.ge.s32.totalorder %s1780_s27, 1 }
   0xd   : > { %p1863_p4 = por %p2076_p1, %p45_p0  ;;  %p208_p7 = scmp.lt.s32.totalorder %s1780_s27, 3 }
   0xe   : > { %p1868_p6 = por %p201_p3, %p45_p0  ;;  %s1782_s10 = smov [#allocation5]  }
   0xf   : > { %s2082_s30 = scalar_select %p1863_p4, 1, 0 }
  0x10   : > { %s2083_s8 = scalar_select %p1868_p6, 1, 0 }
  0x11   : > { %p1873_p8 = pnand %p1221_p5, %p208_p7  ;;  %s220_s11 = sshll.u32 %s1782_s10, 4  ;;  %s221_s11 = int_to_ptr.vmem [resolvable:$true] %s220_s11 }
  0x12   : > { %s1783_s13 = smov [#allocation7]   ;;  %s1613_s15 = scalar_lea.vmem %s221_s11, 6272 }
  0x13   : > { %s2084_s9 = scalar_select %p1873_p8, 1, 0 }
  0x14   : > { %p1486_p9 = pneg %p1873_p8  ;;  %s236_s14 = sshll.u32 %s1783_s13, 4  ;;  %s237_s14 = int_to_ptr.vmem [resolvable:$true] %s236_s14 }
  0x15   : > { %p1614_p13 = scmp.ne.s32.totalorder %s221_s11, %s1613_s15  ;;  %p1621_p5 = scmp.lt.s32.totalorder %s221_s11, %s221_s11 }
  0x16   : > { %p1882_p11 = pnand %p1486_p9, %p2076_p1  ;;  %p1622_p7 = scmp.lt.s32.totalorder %s1613_s15, %s1613_s15 }
  0x18   : > { %p1604_p12 = pneg %p1882_p11  ;;  %p1623_p10 = por %p1622_p7, %p1621_p5 }
  0x1a   : > { %p1616_p0 = pnand %p1614_p13, %p1604_p12 }
  0x1c   : > { %p1617_p3 = pneg %p1616_p0 }
  0x1e   : > { %p1624_p9 = pnand %p1623_p10, %p1617_p3 }
  0x20   : > { %1627 = shalt.err (!%p1624_p9)
}
  0x21   : > { %s1784_s16 = smov 64   ;;  %s1785_s17 = smov 4  }
  0x22   : > { %s2086_s1 = sld [smem:[#allocation15_spill]]  ;;  %s1639_s20 = scalar_lea.vmem %s237_s14, 2048 }
  0x23   : > { %p1640_p1 = scmp.ne.s32.totalorder %s237_s14, %s1639_s20  ;;  %p1647_p2 = scmp.lt.s32.totalorder %s237_s14, %s237_s14 }
  0x24   : > { %p1648_p6 = scmp.lt.s32.totalorder %s1639_s20, %s1639_s20 }
  0x25   : > { %p1642_p13 = pnand %p1640_p1, %p1604_p12 }
  0x26   : > { %p1649_p5 = por %p1648_p6, %p1647_p2 }
  0x27   : > { %p1643_p0 = pneg %p1642_p13 }
  0x28   : > { %1489 = dma.hbm_to_vmem [thread:$0]  (!%p1882_p11), %s2086_s1, 6272, %s221_s11, [#allocation6], %s1784_s16, %s1784_s16, %s1785_s17  }
  0x29   : > { %p1650_p10 = pnand %p1649_p5, %p1643_p0 }
  0x2b   : > { %1653 = shalt.err (!%p1650_p10)
}
  0x2c   : > { %s1786_s21 = smov 128   ;;  %s1787_s22 = smov 8  }
  0x2d   : > { %s2087_s3 = sld [smem:[#allocation16_spill]]  ;;  %s1788_s10 = smov [#allocation8]  }
  0x2e   : > { %s252_s11 = sshll.u32 %s1788_s10, 4  ;;  %s1905_s13 = sadd.s32 1, %s1780_s27   ;;  %s253_s11 = int_to_ptr.vmem [resolvable:$true] %s252_s11 }
  0x2f   : > { %s1665_s15 = scalar_lea.vmem %s253_s11, 2048  ;;  %p1673_p3 = scmp.lt.s32.totalorder %s253_s11, %s253_s11 }
  0x30   : > { %p1666_p1 = scmp.ne.s32.totalorder %s253_s11, %s1665_s15  ;;  %p1674_p7 = scmp.lt.s32.totalorder %s1665_s15, %s1665_s15 }
  0x32   : > { %p1668_p2 = pnand %p1666_p1, %p1604_p12  ;;  %p1675_p9 = por %p1674_p7, %p1673_p3 }
  0x33   : > { %1492 = dma.hbm_to_vmem [thread:$0]  (!%p1882_p11), %s2087_s3, 2048, %s237_s14, [#allocation6], %s1786_s21, %s1786_s21, %s1787_s22  }
  0x34   : > { %p1669_p6 = pneg %p1668_p2 }
  0x36   : > { %p1676_p13 = pnand %p1675_p9, %p1669_p6 }
  0x38   : > { %1679 = shalt.err (!%p1676_p13)
}
  0x39   : > { %1495 = dma.hbm_to_vmem [thread:$0]  (!%p1882_p11), %s2073_s5, 2048, %s253_s11, [#allocation9], %s1786_s21, %s1786_s21, %s1787_s22  }
  0x3a   : > { %s29_s17 = ssub.s32 %s1780_s27, %s1905_s13  ;;  %s32_s18 = sadd.s32 1, %s1776_s26 }
  0x3b   : > { %p30_p12 = scmp.eq.s32.totalorder %s29_s17, 0  ;;  %p39_p0 = scmp.ne.s32.totalorder %s1776_s26, %s1772_s25 }
  0x3c   : > { %p40_p5 = scmp.eq.s32.totalorder %s1780_s27, 0  ;;  %p1507_p10 = scmp.lt.s32.totalorder %s1780_s27, 2 }
  0x3d   : > { %s1923_s12 = scalar_select %p30_p12, %s1776_s26, %s32_s18  }
  0x3e   : > { %p41_p1 = por %p40_p5, %p39_p0  ;;  %p2088_p2 = scmp.eq.s32.totalorder %s1854_s28, 1 }
  0x3f   : > { %s269_s20 = sand.u32 1, %s1776_s26   ;;  %s1468_s23 = smul.u32 896, %s1780_s27 }
  0x40   : > { %p1927_p6 = por %p2088_p2, %p39_p0  ;;  %s1467_s29 = smul.u32 56, %s269_s20 }
  0x41   : > { %p1933_p3 = pnand %p1507_p10, %p41_p1  ;;  %s1940_s11 = scalar_lea.hbm %s2068_s0, %s1468_s23 }
  0x42   : > { %s2089_s19 = scalar_select %p1927_p6, 1, 0 }
  0x43   : > { %s273_s15 = scalar_lea.vmem [#allocation2], %s1467_s29  ;;  %s270_s14 = scalar_lea.sflag [#allocation3], %s269_s20 }
  0x44   : > { %s281_s16 = sshll.u32 %s273_s15, 4  ;;  %s1680_s17 = scalar_lea.hbm %s1940_s11, 896  ;;  %s282_s16 = int_to_ptr.vmem [resolvable:$true] %s281_s16 }
  0x45   : > { %p1681_p11 = scmp.ne.s32.totalorder %s1940_s11, %s1680_s17  ;;  %p1682_p7 = pneg %p1933_p3 }
  0x46   : > { %s1685_s21 = scalar_lea.hbm %s2068_s0, 1792  ;;  %p1686_p12 = scmp.lt.s32.totalorder %s1940_s11, %s2068_s0 }
  0x47   : > { %p1683_p9 = pnand %p1682_p7, %p1681_p11  ;;  %p1687_p0 = scmp.lt.s32.totalorder %s1685_s21, %s1680_s17 }
  0x49   : > { %p1684_p13 = pneg %p1683_p9  ;;  %p1688_p5 = por %p1687_p0, %p1686_p12 }
  0x4b   : > { %p1689_p10 = pnand %p1688_p5, %p1684_p13 }
  0x4d   : > { %1692 = shalt.err (!%p1689_p10)
}
  0x4e   : > { %s1693_s29 = scalar_lea.vmem %s282_s16, 896  ;;  %s1789_s20 = smov [#allocation2]  }
  0x4f   : > { %p1694_p1 = scmp.ne.s32.totalorder %s282_s16, %s1693_s29  ;;  %s1698_s15 = sshll.u32 %s1789_s20, 4  ;;  %s1699_s15 = int_to_ptr.vmem [resolvable:$false] %s1698_s15 }
  0x50   : > { %s1700_s3 = scalar_lea.vmem %s1699_s15, 1792  ;;  %p1701_p11 = scmp.lt.s32.totalorder %s282_s16, %s1699_s15 }
  0x51   : > { %p1696_p2 = pnand %p1694_p1, %p1682_p7  ;;  %p1702_p9 = scmp.lt.s32.totalorder %s1700_s3, %s1693_s29 }
  0x53   : > { %p1697_p6 = pneg %p1696_p2  ;;  %p1703_p4 = por %p1702_p9, %p1701_p11 }
  0x55   : > { %p1704_p8 = pnand %p1703_p4, %p1697_p6 }
  0x57   : > { %1707 = shalt.err (!%p1704_p8)
}
  0x58   : > { %1499 = dma.hbm_to_vmem [thread:$0]  (!%p1933_p3), %s1940_s11, 896, %s282_s16, %s270_s14  }
  0x59   : > { %p2091_p13 = scmp.ne.s32.totalorder %s2084_s9, 0 }
  0x5a   : > { %s1959_s1 = sand.u32 (!%p2091_p13), 1, %s1772_s25   ;;  %p2092_p7 = scmp.ne.s32.totalorder (!%p2091_p13), %s2082_s30, 0 }
  0x5b   : > { %290 = sbr.rel (%p2091_p13) target bundleno = 778 (0x30a), region = 48  ;;  %s293_s18 = scalar_lea.sflag (!%p2091_p13), [#allocation3], %s1959_s1 }
  0x5c   : > { %s1469_s17 = smul.u32 (!%p2091_p13), 56, %s1959_s1 }
  0x5e   : > { %s1963_s21 = scalar_lea.vmem (!%p2091_p13), [#allocation2], %s1469_s17 }
  0x60   : > { %1751 = dma.done.wait (%p2092_p7), %s293_s18, 896  }
  0x61   : > { %1753 = vsyncadd (%p2092_p7), %s293_s18, 4294966400  ;;  %p2093_p4 = scmp.eq.s32.totalorder %s1854_s28, 0 }
  0x63   : > { %1755 = dma.done.wait (%p2093_p4), [#allocation6], 8320   ;;  %p2094_p8 = pmov %p2093_p4 }
  0x64   : > { %p2095_p6 = pmov %p2093_p4 }
  0x65   : > { %1757 = vsyncadd (%p2094_p8), [#allocation6], 4294958976 }
  0x66   : > { %1759 = dma.done.wait (%p2095_p6), [#allocation9], 2048   ;;  %p2096_p3 = pmov %p2093_p4 }
  0x67   : > { %v1553_v0 = vld [vmem:[#allocation5 + $0x78] sm:$0xff]   ;;  %v1557_v4 = vld [vmem:[#allocation5 + $0x70] sm:$0xff]   ;;  %v1561_v8 = vld [vmem:[#allocation5 + $0x68] sm:$0xff]   ;;  %v1790_v44 = vmov 0.0   ;;  %vm1791_vm0 = vmmov 0   ;;  %vm753_vm1 = vcmask 130048  }
  0x68   : > { %1761 = vsyncadd (%p2096_p3), [#allocation9], 4294965248  ;;  %v1554_v1 = vld [vmem:[#allocation5 + $0x38] sm:$0xff]   ;;  %1289 = vmatprep.subr.bf16.mxu0 %v1553_v0  ;;  %v1558_v5 = vld [vmem:[#allocation5 + $0x30] sm:$0xff]   ;;  %s1231_s11 = sshll.u32 %s1959_s1, 2  ;;  %s1286_s22 = sshll.u32 %s1854_s28, 6 }
  0x69   : > { %v1555_v2 = vld [vmem:[#allocation5 + $0xf8] sm:$0xff]   ;;  %1290 = vmatpush3.bf16.msra.mxu0 %v1554_v1  ;;  %v1559_v6 = vld [vmem:[#allocation5 + $0xf0] sm:$0xff]   ;;  %v1562_v9 = vld [vmem:[#allocation5 + $0x28] sm:$0xff]   ;;  %s338_s23 = scalar_lea.vmem [#allocation10], %s1231_s11  ;;  %s1119_s17 = scalar_lea.hbm %s2075_s7, %s1286_s22 }
  0x6a   : > { %v1556_v3 = vld [vmem:[#allocation5 + $0xb8] sm:$0xff]   ;;  %1311 = vmatprep.subr.bf16.mxu1 %v1555_v2  ;;  %1291 = vmatprep.subr.bf16.mxu0 %v1557_v4  ;;  %v1560_v7 = vld [vmem:[#allocation5 + $0xb0] sm:$0xff]   ;;  %v1563_v10 = vld [vmem:[#allocation5 + $0xe8] sm:$0xff]   ;;  %s1121_s29 = sshll.u32 %s338_s23, 4  ;;  %s1108_s18 = scalar_lea.sflag [#allocation4], %s1959_s1  ;;  %s1122_s29 = int_to_ptr.vmem [resolvable:$true] %s1121_s29 }
  0x6b   : > { %1312 = vmatpush3.bf16.msra.mxu1 %v1556_v3  ;;  %v1564_v11 = vld [vmem:[#allocation5 + $0xa8] sm:$0xff]   ;;  %v1565_v12 = vld [vmem:[#allocation5 + $0x60] sm:$0xff]   ;;  %v1569_v16 = vld [vmem:[#allocation5 + $0x58] sm:$0xff]   ;;  %p2097_p0 = scmp.ne.s32.totalorder %s2089_s19, 0  ;;  %s1792_s3 = smov [#allocation10]  }
  0x6c   : > { %1313 = vmatprep.subr.bf16.mxu1 %v1559_v6  ;;  %v1566_v13 = vld [vmem:[#allocation5 + $0x20] sm:$0xff]   ;;  %v1570_v17 = vld [vmem:[#allocation5 + $0x18] sm:$0xff]   ;;  %v1573_v20 = vld [vmem:[#allocation5 + $0x50] sm:$0xff]   ;;  %s1712_s30 = sshll.u32 %s1792_s3, 4  ;;  %s1713_s30 = int_to_ptr.vmem [resolvable:$false] %s1712_s30 }
  0x6d   : > { %1292 = vmatpush3.bf16.msra.mxu0 %v1558_v5  ;;  %v1567_v14 = vld [vmem:[#allocation5 + $0xe0] sm:$0xff]   ;;  %v1571_v18 = vld [vmem:[#allocation5 + $0xd8] sm:$0xff]   ;;  %v1574_v21 = vld [vmem:[#allocation5 + $0x10] sm:$0xff]   ;;  %s1714_s28 = scalar_lea.vmem %s1713_s30, 128  ;;  %p1715_p1 = scmp.lt.s32.totalorder %s1122_s29, %s1713_s30 }
  0x6e   : > { %1293 = vmatprep.subr.bf16.mxu0 %v1561_v8  ;;  %v1568_v15 = vld [vmem:[#allocation5 + $0xa0] sm:$0xff]   ;;  %v1572_v19 = vld [vmem:[#allocation5 + $0x98] sm:$0xff]   ;;  %v1575_v22 = vld [vmem:[#allocation5 + $0xd0] sm:$0xff]  }
  0x6f   : > { %1314 = vmatpush3.bf16.msra.mxu1 %v1560_v7  ;;  %v1576_v23 = vld [vmem:[#allocation5 + $0x90] sm:$0xff]   ;;  %v1577_v24 = vld [vmem:[#allocation5 + $0x48] sm:$0xff]   ;;  %v1581_v28 = vld [vmem:[#allocation5 + $0x40] sm:$0xff]  }
  0x70   : > { %1315 = vmatprep.subr.bf16.mxu1 %v1563_v10  ;;  %v1578_v25 = vld [vmem:[#allocation5 + $0x8] sm:$0xff]   ;;  %v1582_v29 = vld [vmem:[#allocation5] sm:$0xff]   ;;  %v341_v31 = vld [vmem:[%s1963_s21 + $0x8] sm:$0xff] }
  0x71   : > { %1294 = vmatpush3.bf16.msra.mxu0 %v1562_v9  ;;  %v1579_v26 = vld [vmem:[#allocation5 + $0xc8] sm:$0xff]   ;;  %v1583_v30 = vld [vmem:[#allocation5 + $0xc0] sm:$0xff]   ;;  %v348_v32 = vpack.c.bf16 %v341_v31, %v341_v31  ;;  %v1585_v36 = vld [vmem:[#allocation5 + $0x178] sm:$0xff]  }
  0x72   : > { %1295 = vmatprep.subr.bf16.mxu0 %v1565_v12  ;;  %v1580_v27 = vld [vmem:[#allocation5 + $0x88] sm:$0xff]   ;;  %v1584_v33 = vld [vmem:[#allocation5 + $0x80] sm:$0xff]   ;;  %v1586_v39 = vld [vmem:[#allocation5 + $0x138] sm:$0xff]  }
  0x73   : > { %1316 = vmatpush3.bf16.msra.mxu1 %v1564_v11  ;;  %v340_v34 = vld [vmem:[%s1963_s21] sm:$0xff]  ;;  %v343_v37 = vld [vmem:[%s1963_s21 + $0x18] sm:$0xff]  ;;  %789 = vmatprep.mubr.bf16.mxu0 %v348_v32  ;;  %v342_v40 = vld [vmem:[%s1963_s21 + $0x10] sm:$0xff] }
  0x74   : > { %1317 = vmatprep.subr.bf16.mxu1 %v1567_v14  ;;  %v347_v35 = vpack.c.bf16 %v340_v34, %v340_v34  ;;  %v350_v38 = vpack.c.bf16 %v343_v37, %v343_v37  ;;  %v349_v41 = vpack.c.bf16 %v342_v40, %v342_v40  ;;  %v1587_v42 = vld [vmem:[#allocation5 + $0x170] sm:$0xff]   ;;  %v1589_v45 = vld [vmem:[#allocation5 + $0x168] sm:$0xff]   ;;  %v1591_v47 = vld [vmem:[#allocation5 + $0x160] sm:$0xff]  }
  0x75   : > { %1296 = vmatpush3.bf16.msra.mxu0 %v1566_v13  ;;  %v1588_v43 = vld [vmem:[#allocation5 + $0x130] sm:$0xff]   ;;  %v1590_v46 = vld [vmem:[#allocation5 + $0x128] sm:$0xff]   ;;  %v1592_v48 = vld [vmem:[#allocation5 + $0x120] sm:$0xff]  }
  0x76   : > { %1297 = vmatprep.subr.bf16.mxu0 %v1569_v16  ;;  %829 = vmatprep.mubr.bf16.mxu1 %v350_v38  ;;  %v1593_v49 = vld [vmem:[#allocation5 + $0x158] sm:$0xff]   ;;  %v1595_v51 = vld [vmem:[#allocation5 + $0x150] sm:$0xff]   ;;  %v1601_v52 = vld [vmem:[#allocation5 + $0x180] sm:$0xff]  }
  0x77   : > { %1318 = vmatpush3.bf16.msra.mxu1 %v1568_v15  ;;  %v1594_v50 = vld [vmem:[#allocation5 + $0x118] sm:$0xff]   ;;  %v1596_v56 = vld [vmem:[#allocation5 + $0x110] sm:$0xff]   ;;  %v1597_v58 = vld [vmem:[#allocation5 + $0x148] sm:$0xff]  }
  0x78   : > { %1319 = vmatprep.subr.bf16.mxu1 %v1571_v18  ;;  %v345_v53 = vld [vmem:[%s1963_s21 + $0x28] sm:$0xff]  ;;  %v346_v55 = vld [vmem:[%s1963_s21 + $0x30] sm:$0xff]  ;;  %v1598_v59 = vld [vmem:[#allocation5 + $0x108] sm:$0xff]  }
  0x79   : > { %1298 = vmatpush3.bf16.msra.mxu0 %v1570_v17  ;;  %v352_v54 = vpack.c.bf16 %v345_v53, %v345_v53  ;;  %v353_v57 = vpack.c.bf16 %v346_v55, %v346_v55  ;;  %v1599_v60 = vld [vmem:[#allocation5 + $0x140] sm:$0xff]   ;;  %v344_v62 = vld [vmem:[%s1963_s21 + $0x20] sm:$0xff]  ;;  %v932_v1 = vld [vmem:[#allocation7 + $0x70] sm:$0xff]  ;;  %s1708_s21 = scalar_lea.vmem %s1122_s29, 64 }
  0x7a   : > { %1299 = vmatprep.subr.bf16.mxu0 %v1573_v20  ;;  %v1600_v61 = vld [vmem:[#allocation5 + $0x100] sm:$0xff]   ;;  %v351_v63 = vpack.c.bf16 %v344_v62, %v344_v62  ;;  %v931_v2 = vld [vmem:[#allocation7 + $0x68] sm:$0xff]  ;;  %v930_v3 = vld [vmem:[#allocation7 + $0x60] sm:$0xff]  ;;  %p1709_p12 = scmp.ne.s32.totalorder %s1122_s29, %s1708_s21  ;;  %p1716_p2 = scmp.lt.s32.totalorder %s1714_s28, %s1708_s21 }
  0x7b   : > { %1320 = vmatpush3.bf16.msra.mxu1 %v1572_v19  ;;  %v933_v0 = vld [vmem:[#allocation7 + $0x78] sm:$0xff]  ;;  %v928_v5 = vld [vmem:[#allocation7 + $0x50] sm:$0xff]  ;;  %v927_v6 = vld [vmem:[#allocation7 + $0x48] sm:$0xff] }
  0x7c   : > { %1321 = vmatprep.subr.bf16.mxu1 %v1575_v22  ;;  %v929_v4 = vld [vmem:[#allocation7 + $0x58] sm:$0xff]  ;;  %v926_v7 = vld [vmem:[#allocation7 + $0x40] sm:$0xff]  ;;  %v924_v9 = vld [vmem:[#allocation7 + $0x30] sm:$0xff]  ;;  %p1710_p5 = pnand %p1709_p12, %p2097_p0  ;;  %p1717_p11 = por %p1716_p2, %p1715_p1 }
  0x7d   : > { %1300 = vmatpush3.bf16.msra.mxu0 %v1574_v21  ;;  %v925_v8 = vld [vmem:[#allocation7 + $0x38] sm:$0xff]  ;;  %v923_v10 = vld [vmem:[#allocation7 + $0x28] sm:$0xff]  ;;  %v922_v11 = vld [vmem:[#allocation7 + $0x20] sm:$0xff] }
  0x7e   : > { %1301 = vmatprep.subr.bf16.mxu0 %v1577_v24  ;;  %v921_v12 = vld [vmem:[#allocation7 + $0x18] sm:$0xff]  ;;  %v920_v13 = vld [vmem:[#allocation7 + $0x10] sm:$0xff]  ;;  %v919_v14 = vld [vmem:[#allocation7 + $0x8] sm:$0xff]  ;;  %p1711_p10 = pneg %p1710_p5 }
  0x7f   : > { %1322 = vmatpush3.bf16.msra.mxu1 %v1576_v23  ;;  %v918_v15 = vld [vmem:[#allocation7] sm:$0xff]  ;;  %v1027_v16 = vld [vmem:[#allocation8 + $0x78] sm:$0xff]  ;;  %v1026_v17 = vld [vmem:[#allocation8 + $0x70] sm:$0xff] }
  0x80   : > { %1323 = vmatprep.subr.bf16.mxu1 %v1579_v26  ;;  %v1025_v18 = vld [vmem:[#allocation8 + $0x68] sm:$0xff]  ;;  %v1024_v19 = vld [vmem:[#allocation8 + $0x60] sm:$0xff]  ;;  %v1023_v20 = vld [vmem:[#allocation8 + $0x58] sm:$0xff]  ;;  %p1718_p9 = pnand %p1717_p11, %p1711_p10 }
  0x81   : > { %1302 = vmatpush3.bf16.msra.mxu0 %v1578_v25  ;;  %v1022_v21 = vld [vmem:[#allocation8 + $0x50] sm:$0xff]  ;;  %v1021_v22 = vld [vmem:[#allocation8 + $0x48] sm:$0xff]  ;;  %v1020_v23 = vld [vmem:[#allocation8 + $0x40] sm:$0xff] }
  0x82   : > { %1303 = vmatprep.subr.bf16.mxu0 %v1581_v28  ;;  %v1019_v24 = vld [vmem:[#allocation8 + $0x38] sm:$0xff]  ;;  %v1018_v25 = vld [vmem:[#allocation8 + $0x30] sm:$0xff]  ;;  %v1017_v26 = vld [vmem:[#allocation8 + $0x28] sm:$0xff] }
  0x83   : > { %1324 = vmatpush3.bf16.msra.mxu1 %v1580_v27  ;;  %v1016_v27 = vld [vmem:[#allocation8 + $0x20] sm:$0xff]  ;;  %v1015_v28 = vld [vmem:[#allocation8 + $0x18] sm:$0xff]  ;;  %v1014_v55 = vld [vmem:[#allocation8 + $0x10] sm:$0xff] }
  0x84   : > { %1325 = vmatprep.subr.bf16.mxu1 %v1583_v30 }
  0x85   : > { %1304 = vmatpush3.bf16.msra.mxu0 %v1582_v29 }
  0x86   : > { %1333 = vmatprep.subr.bf16.mxu0 %v1585_v36 }
  0x87   : > { %1326 = vmatpush3.bf16.msra.mxu1 %v1584_v33 }
  0x88   : > { %790 = vmatmul.mubr.bf16.vlgmr.msra.gmra.mxu0 %v347_v35  ;;  %1391 = vmatprep.subr.bf16.mxu1 %v1790_v44 }
  0x89   : > { %1334 = vmatpush3.bf16.msra.mxu0 %v1586_v39  ;;  %869 = vmatprep.mubr.bf16.mxu0 %v352_v54 }
  0x8a   : > { %830 = vmatmul.mubr.bf16.vlgmr.msra.gmra.mxu1 %v349_v41  ;;  %1335 = vmatprep.subr.bf16.mxu0 %v1587_v42  ;;  %v1232_v42 = vld [vmem:[%s2070_s2] ss:$0 sm:$0xff] }
  0x8b   : > { %1393 = vmatprep.mubr.msk.bf16.mxu1 %vm1791_vm0, %v1790_v44  ;;  %1392 = vmatpush3.bf16.msra.mxu1 %v1601_v52 }
  0x8c   : > { %1397 = vmatprep.subr.mxu1 %v1790_v44 }
  0x8d   : > { %1336 = vmatpush3.bf16.msra.mxu0 %v1588_v43 }
  0x8e   : > { %1337 = vmatprep.subr.bf16.mxu0 %v1589_v45 }
  0x91   : > { %1338 = vmatpush3.bf16.msra.mxu0 %v1590_v46 }
  0x92   : > { %1339 = vmatprep.subr.bf16.mxu0 %v1591_v47  ;;  %1394 = vmatmul.mubr.msk.bf16.vlgmr.msra.gmra.mxu1 %vm753_vm1, %v353_v57  ;;  %v1012_v57 = vld [vmem:[#allocation8] sm:$0xff] }
  0x93   : > { %1429 = vmatprep.mubr.msk.f32.mxu1 %vm1791_vm0, %v1790_v44  ;;  %1398 = vmatpush3.msra.mxu1 %v933_v0 }
  0x94   : > { %1399 = vmatprep.subr.mxu1 %v1790_v44 }
  0x95   : > { %1340 = vmatpush3.bf16.msra.mxu0 %v1592_v48  ;;  %1400 = vmatpush3.msra.mxu1 %v932_v1 }
  0x96   : > { %1341 = vmatprep.subr.bf16.mxu0 %v1593_v49  ;;  %1401 = vmatprep.subr.mxu1 %v1790_v44 }
  0x97   : > { %1402 = vmatpush3.msra.mxu1 %v931_v2 }
  0x98   : > { %1403 = vmatprep.subr.mxu1 %v1790_v44 }
  0x99   : > { %1342 = vmatpush3.bf16.msra.mxu0 %v1594_v50  ;;  %1404 = vmatpush3.msra.mxu1 %v930_v3 }
  0x9a   : > { %1343 = vmatprep.subr.bf16.mxu0 %v1595_v51  ;;  %1405 = vmatprep.subr.mxu1 %v1790_v44 }
  0x9b   : > { %1406 = vmatpush3.msra.mxu1 %v929_v4 }
  0x9c   : > { %1407 = vmatprep.subr.mxu1 %v1790_v44 }
  0x9d   : > { %1344 = vmatpush3.bf16.msra.mxu0 %v1596_v56  ;;  %1408 = vmatpush3.msra.mxu1 %v928_v5  ;;  %v1013_v56 = vld [vmem:[#allocation8 + $0x8] sm:$0xff] }
  0x9e   : > { %1345 = vmatprep.subr.bf16.mxu0 %v1597_v58  ;;  %1409 = vmatprep.subr.mxu1 %v1790_v44  ;;  %v1283_v58 = vld [vmem:[%s2072_s4] ss:$0 sm:$0xff] }
  0x9f   : > { %1410 = vmatpush3.msra.mxu1 %v927_v6 }
  0xa0   : > { %1411 = vmatprep.subr.mxu1 %v1790_v44 }
  0xa1   : > { %1346 = vmatpush3.bf16.msra.mxu0 %v1598_v59  ;;  %1412 = vmatpush3.msra.mxu1 %v926_v7 }
  0xa2   : > { %1347 = vmatprep.subr.bf16.mxu0 %v1599_v60  ;;  %1413 = vmatprep.subr.mxu1 %v1790_v44 }
  0xa3   : > { %1414 = vmatpush3.msra.mxu1 %v925_v8 }
  0xa4   : > { %1415 = vmatprep.subr.mxu1 %v1790_v44 }
  0xa5   : > { %1348 = vmatpush3.bf16.msra.mxu0 %v1600_v61  ;;  %1416 = vmatpush3.msra.mxu1 %v924_v9 }
  0xa6   : > { %1432 = vmatprep.subr.mxu0 %v1790_v44  ;;  %1417 = vmatprep.subr.mxu1 %v1790_v44 }
  0xa7   : > { %1418 = vmatpush3.msra.mxu1 %v923_v10 }
  0xa8   : > { %870 = vmatmul.mubr.bf16.vlgmr.msra.gmra.mxu0 %v351_v63  ;;  %1419 = vmatprep.subr.mxu1 %v1790_v44  ;;  %v1284_v63 = vld [vmem:[%s2074_s6] ss:$0 sm:$0xff] }
  0xa9   : > { %1464 = vmatprep.mubr.msk.f32.mxu0 %vm1791_vm0, %v1790_v44  ;;  %1420 = vmatpush3.msra.mxu1 %v922_v11 }
  0xaa   : > { %1421 = vmatprep.subr.mxu1 %v1790_v44  ;;  %1433 = vmatpush3.msra.mxu0 %v1027_v16 }
  0xab   : > { %1422 = vmatpush3.msra.mxu1 %v921_v12  ;;  %1434 = vmatprep.subr.mxu0 %v1790_v44 }
  0xac   : > { %1423 = vmatprep.subr.mxu1 %v1790_v44  ;;  %1435 = vmatpush3.msra.mxu0 %v1026_v17 }
  0xad   : > { %1424 = vmatpush3.msra.mxu1 %v920_v13  ;;  %1436 = vmatprep.subr.mxu0 %v1790_v44 }
  0xae   : > { %1425 = vmatprep.subr.mxu1 %v1790_v44  ;;  %1437 = vmatpush3.msra.mxu0 %v1025_v18 }
  0xaf   : > { %1426 = vmatpush3.msra.mxu1 %v919_v14  ;;  %1438 = vmatprep.subr.mxu0 %v1790_v44 }
  0xb0   : > { %1427 = vmatprep.subr.mxu1 %v1790_v44  ;;  %1439 = vmatpush3.msra.mxu0 %v1024_v19 }
  0xb1   : > { %1428 = vmatpush3.msra.mxu1 %v918_v15  ;;  %1440 = vmatprep.subr.mxu0 %v1790_v44 }
  0xb2   : > { %1441 = vmatpush3.msra.mxu0 %v1023_v20 }
  0xb3   : > { %1442 = vmatprep.subr.mxu0 %v1790_v44 }
  0xb4   : > { %1443 = vmatpush3.msra.mxu0 %v1022_v21 }
  0xb5   : > { %1444 = vmatprep.subr.mxu0 %v1790_v44 }
  0xb6   : > { %1445 = vmatpush3.msra.mxu0 %v1021_v22 }
  0xb7   : > { %1446 = vmatprep.subr.mxu0 %v1790_v44 }
  0xb8   : > { %1447 = vmatpush3.msra.mxu0 %v1020_v23 }
  0xb9   : > { %1448 = vmatprep.subr.mxu0 %v1790_v44 }
  0xba   : > { %1449 = vmatpush3.msra.mxu0 %v1019_v24 }
  0xbb   : > { %1450 = vmatprep.subr.mxu0 %v1790_v44 }
  0xbc   : > { %1451 = vmatpush3.msra.mxu0 %v1018_v25 }
  0xbd   : > { %1452 = vmatprep.subr.mxu0 %v1790_v44 }
  0xbe   : > { %1453 = vmatpush3.msra.mxu0 %v1017_v26 }
  0xbf   : > { %1454 = vmatprep.subr.mxu0 %v1790_v44 }
  0xc0   : > { %1455 = vmatpush3.msra.mxu0 %v1016_v27 }
  0xc1   : > { %1456 = vmatprep.subr.mxu0 %v1790_v44 }
  0xc2   : > { %1457 = vmatpush3.msra.mxu0 %v1015_v28 }
  0xc3   : > { %1458 = vmatprep.subr.mxu0 %v1790_v44 }
  0xc4   : > { %1459 = vmatpush3.msra.mxu0 %v1014_v55 }
  0xc5   : > { %1460 = vmatprep.subr.mxu0 %v1790_v44 }
  0xc6   : > { %1461 = vmatpush3.msra.mxu0 %v1013_v56 }
  0xc7   : > { %1462 = vmatprep.subr.mxu0 %v1790_v44 }
  0xc8   : > { %1463 = vmatpush3.msra.mxu0 %v1012_v57 }
 0x148   : > { %v1305_v29 = vpop.f32.mrf.mxu0 }
 0x14a   : > { %v1306_v30 = vpop.f32.mrf.mxu0  ;;  %v1327_v31 = vpop.f32.mrf.mxu1 }
 0x14b   : > { %v1307_v41 = vadd.f32 %v1306_v30, %v1305_v29 }
 0x14c   : > { %v1308_v32 = vpop.f32.mrf.mxu0  ;;  %v1328_v33 = vpop.f32.mrf.mxu1 }
 0x14d   : > { %v792_v43 = vadd.f32 %v1307_v41, %v1232_v42  ;;  %v1329_v45 = vadd.f32 %v1328_v33, %v1327_v31 }
 0x14e   : > { %v1309_v34 = vpop.f32.mrf.mxu0  ;;  %v1330_v35 = vpop.f32.mrf.mxu1 }
 0x14f   : > { %v832_v48 = vadd.f32 %v1329_v45, %v792_v43 }
 0x150   : > { %v1331_v36 = vpop.f32.mrf.mxu1 }
 0x152   : > { %v911_v37 = vpop.f32.mrf.mxu1 }
 0x154   : > { %v1395_v38 = vpop.f32.mrf.mxu1 }
 0x156   : > { %v914_v39 = vpop.f32.mrf.mxu1 }
 0x158   : > { %v1396_v40 = vpop.f32.mrf.mxu1 }
 0x168   : > { %v1349_v46 = vpop.f32.mrf.mxu0 }
 0x16a   : > { %v1350_v47 = vpop.f32.mrf.mxu0 }
 0x16b   : > { %v1351_v49 = vadd.f32 %v1350_v47, %v1349_v46 }
 0x16c   : > { %v1352_v50 = vpop.f32.mrf.mxu0 }
 0x16d   : > { %v872_v51 = vadd.f32 %v1351_v49, %v832_v48 }
 0x16e   : > { %v1353_v52 = vpop.f32.mrf.mxu0 }
 0x16f   : > { %v912_v53 = vadd.f32 %v911_v37, %v872_v51 }
 0x171   : > { %v917_v54 = vmax.f32 %v912_v53, 0.0 }
 0x173   : > { %1430 = vmatmul.mubr.f32.vlgmr.msra.gmra.mxu1 %v917_v54 }
 0x233   : > { %v1007_v59 = vpop.f32.mrf.mxu1 }
 0x234   : > { %v1008_v60 = vadd.f32 %v1283_v58, %v1007_v59 }
 0x235   : > { %v1431_v61 = vpop.f32.mrf.mxu1 }
 0x236   : > { %v1011_v62 = vmax.f32 %v1008_v60, 0.0 }
 0x238   : > { %1465 = vmatmul.mubr.f32.vlgmr.msra.gmra.mxu0 %v1011_v62 }
 0x2f8   : > { %v1101_v0 = vpop.f32.mrf.mxu0 }
 0x2f9   : > { %v1102_v44 = vadd.f32 %v1284_v63, %v1101_v0 }
 0x2fa   : > { %v1466_v1 = vpop.f32.mrf.mxu0 }
 0x2fb   : > { %v1105_v2 = vpack.c.bf16 %v1102_v44, %v1102_v44 }
 0x2fd   : > { %1106 = vst [vmem:[%s338_s23] sm:$0xf] %v1105_v2 }
 0x2fe   : > { %1721 = shalt.err (!%p1718_p9)
}
 0x2ff   : > { %s1722_s9 = scalar_lea.hbm %s1119_s17, 64  ;;  %s1726_s11 = scalar_lea.hbm %s2075_s7, 128 }
 0x300   : > { %p1723_p13 = scmp.ne.s32.totalorder %s1119_s17, %s1722_s9  ;;  %p1727_p8 = scmp.lt.s32.totalorder %s1119_s17, %s2075_s7 }
 0x301   : > { %p1728_p6 = scmp.lt.s32.totalorder %s1726_s11, %s1722_s9 }
 0x302   : > { %p1724_p7 = pnand %p1723_p13, %p2097_p0 }
 0x303   : > { %p1729_p3 = por %p1728_p6, %p1727_p8 }
 0x304   : > { %p1725_p4 = pneg %p1724_p7 }
 0x306   : > { %p1730_p12 = pnand %p1729_p3, %p1725_p4 }
 0x308   : > { %1733 = shalt.err (!%p1730_p12)
}
 0x309   : > { %1484 = dma.vmem_to_hbm [thread:$0]  (%p2097_p0), %s1122_s29, 64, %s1119_s17, %s1108_s18  }
 0x30a PF: > { %s1133_s22 = sand.u32 1, %s1768_s24   ;;  %p2098_p5 = scmp.ne.s32.totalorder %s2083_s8, 0 }
 0x30b   : > { %p2099_p10 = scmp.ge.s32.totalorder %s1780_s27, 2  ;;  %s1134_s23 = scalar_lea.sflag [#allocation4], %s1133_s22 }
 0x30d   : > { %p1501_p1 = pnand %p2099_p10, %p2098_p5 }
 0x30f   : > { %p1502_p2 = pneg %p1501_p1 }
 0x311   : > { %1763 = dma.done.wait (%p1502_p2), %s1134_s23, 64  }
 0x312   : > { %1765 = vsyncadd (%p1502_p2), %s1134_s23, 4294967232  ;;  %p22_p11 = scmp.ge.s32.totalorder %s1905_s13, 4   ;;  %s2100_s24 = smov %s1772_s25 }
 0x313   : > { %s2101_s25 = smov %s1776_s26  ;;  %s2102_s26 = smov %s1923_s12 }
 0x314   : > { %s2103_s27 = smov %s1905_s13  ;;  %24 = sbr.rel (!%p22_p11) target bundleno = 10 (0xa), region = 105 }
 0x319   :  { %1139 = vsyncpa [#allocation3], 1 }
 0x31a   :  { %1141 = vsyncpa [#allocation3 + $0x1], 1 }
 0x31b   :  { %1142 = vsyncpa [#allocation6], 1 }
 0x31c   :  { %1143 = vsyncpa [#allocation9], 1 }
 0x31d   :  { %1144 = vsyncpa [#allocation4], 1 }
 0x31e   :  { %1146 = vsyncpa [#allocation4 + $0x1], 1 }

</bundles_post_ra>
